<compile_context>
chip_gen: v6e
topology: v6e:2x2x1
jax: 0.10.0
libtpu: 0.0.40
codegen_flags: <defaults>
</compile_context>

<pallas_src>
import jax
import jax.numpy as jnp
from jax.experimental import pallas as pl
from jax.experimental.pallas import tpu as pltpu


def autoencoder_kernel(x_ref, wg_ref, bg_ref, wh_ref, bh_ref, out_ref):
    """Fused: out = sigmoid(sigmoid(x @ Wg + bg) @ Wh + bh) for one batch tile.

    x/Wg/Wh may be bf16 (MXU operands); accumulation, bias add and sigmoid are f32.
    """
    x = x_ref[...]

    # Encoder: (tb, nq) @ (nq, k) -> (tb, k) on the MXU (f32 accumulate).
    z1 = jnp.dot(x, wg_ref[...], preferred_element_type=jnp.float32) + bg_ref[...]
    enc = jax.nn.sigmoid(z1)                      # f32 on the VPU/EUP

    # Decoder: (tb, k) @ (k, nq) -> (tb, nq). Cast activations to the MXU dtype
    # (no-op when weights are f32), accumulate in f32.
    z2 = jnp.dot(enc.astype(wh_ref.dtype), wh_ref[...],
                 preferred_element_type=jnp.float32) + bh_ref[...]
    out_ref[...] = jax.nn.sigmoid(z2).astype(out_ref.dtype)


def default_mxu_dtype():
    """bf16 MXU operands on v6e/v7x (their MXU peak is bf16); f32 elsewhere."""
    try:
        kind = jax.devices()[0].device_kind.lower()
    except Exception:
        return jnp.float32
    if "v6" in kind or "v7" in kind:
        return jnp.bfloat16
    return jnp.float32


def prepare_params(g_weight, g_bias, h_weight, h_bias, mxu_dtype=jnp.float32):
    """One-time parameter prep: transpose Linear weights to (in, out) and reshape
    biases to (1, out). Do this ONCE, not per forward call."""
    wg = jnp.transpose(jnp.asarray(g_weight)).astype(mxu_dtype)   # (num_question, k)
    wh = jnp.transpose(jnp.asarray(h_weight)).astype(mxu_dtype)   # (k, num_question)
    bg = jnp.asarray(g_bias).reshape(1, -1).astype(jnp.float32)   # (1, k)
    bh = jnp.asarray(h_bias).reshape(1, -1).astype(jnp.float32)   # (1, num_question)
    return wg, bg, wh, bh


def _choose_batch_tile(batch):
    # Single grid step for modest batches (avoids per-step overhead entirely);
    # MXU-aligned 256-row tiles for large batches (multiple of 128 and 256).
    tb = batch if batch <= 512 else 256
    # Keep the sublane dim a multiple of 8 (f32 vreg sublanes).
    return max(8, ((tb + 7) // 8) * 8)


def autoencoder_forward(x, wg, bg, wh, bh, *, tb=None):
    """Run the AutoEncoder forward pass with a fused Pallas kernel.

    x:  (batch, num_question)
    wg: (num_question, k)   pre-transposed encoder weight (see prepare_params)
    bg: (1, k)
    wh: (k, num_question)   pre-transposed decoder weight
    bh: (1, num_question)
    """
    batch, num_question = x.shape
    k = wg.shape[1]
    out_dtype = x.dtype
    mxu_dtype = wg.dtype

    # Cast activations to the MXU operand dtype (bf16 on v6e/v7x halves DMA bytes
    # and roughly doubles MXU throughput; f32 path is a no-op cast).
    x_m = x.astype(mxu_dtype)

    if tb is None:
        tb = _choose_batch_tile(batch)
    tb = min(max(8, ((tb + 7) // 8) * 8), max(batch, 8) if batch <= 512 else tb)

    # Pad the batch so any batch size works (padded rows are computed and dropped).
    n_steps = -(-batch // tb)
    padded = n_steps * tb
    if padded != batch:
        x_m = jnp.pad(x_m, ((0, padded - batch), (0, 0)))

    grid = (n_steps,)

    out = pl.pallas_call(
        autoencoder_kernel,
        out_shape=jax.ShapeDtypeStruct((padded, num_question), out_dtype),
        grid_spec=pltpu.PrefetchScalarGridSpec(
            num_scalar_prefetch=0,
            grid=grid,
            in_specs=[
                # batch tile of the input
                pl.BlockSpec((tb, num_question), lambda i: (i, 0)),
                # full weight / bias tensors, constant index across the grid
                pl.BlockSpec((num_question, k), lambda i: (0, 0)),
                pl.BlockSpec((1, k), lambda i: (0, 0)),
                pl.BlockSpec((k, num_question), lambda i: (0, 0)),
                pl.BlockSpec((1, num_question), lambda i: (0, 0)),
            ],
            out_specs=pl.BlockSpec((tb, num_question), lambda i: (i, 0)),
        ),
        compiler_params=pltpu.CompilerParams(
            # Batch axis is fully parallel (lets v7x shard grid steps across its 2 TCs
            # once the batch is large enough to produce >= 2 steps).
            dimension_semantics=("parallel",),
        ),
    )(x_m, wg, bg, wh, bh)

    return out[:batch] if padded != batch else out


def reference_forward(x, g_weight, g_bias, h_weight, h_bias):
    enc = jax.nn.sigmoid(x @ g_weight.T + g_bias)
    return jax.nn.sigmoid(enc @ h_weight.T + h_bias)


if __name__ == "__main__":
    # Small shapes consistent with the module: user vectors of length num_question.
    batch = 16
    num_question = 256
    k = 128

    key = jax.random.PRNGKey(0)
    kx, kg, kgb, kh, khb = jax.random.split(key, 5)

    # Deterministic PyTorch-style Linear init: U(-1/sqrt(fan_in), 1/sqrt(fan_in)).
    g_bound = 1.0 / jnp.sqrt(jnp.float32(num_question))
    h_bound = 1.0 / jnp.sqrt(jnp.float32(k))
    g_weight = jax.random.uniform(kg, (k, num_question), jnp.float32, -g_bound, g_bound)
    g_bias = jax.random.uniform(kgb, (k,), jnp.float32, -g_bound, g_bound)
    h_weight = jax.random.uniform(kh, (num_question, k), jnp.float32, -h_bound, h_bound)
    h_bias = jax.random.uniform(khb, (num_question,), jnp.float32, -h_bound, h_bound)

    x = jax.random.uniform(kx, (batch, num_question), jnp.float32)  # user vectors in [0, 1)

    # bf16 MXU operands on v6e/v7x, f32 elsewhere. Params are prepared ONCE.
    mxu_dtype = default_mxu_dtype()
    wg, bg, wh, bh = prepare_params(g_weight, g_bias, h_weight, h_bias, mxu_dtype)

    out = autoencoder_forward(x, wg, bg, wh, bh)
    out = jax.block_until_ready(out)

    ref = reference_forward(x, g_weight, g_bias, h_weight, h_bias)
    assert out.shape == (batch, num_question)
    # bf16 MXU operands deviate from the pure-f32 reference at the ~1e-3 level.
    tol = 2e-2 if mxu_dtype == jnp.bfloat16 else 1e-5
    assert jnp.allclose(out.astype(jnp.float32), ref, atol=tol, rtol=tol), \
        "Pallas output mismatch vs reference"

    print("KERNEL_OK")
</pallas_src>

<mosaic_0001>
module attributes {stable_mosaic.version = 11 : i64} {
  func.func @autoencoder_kernel(%arg0: i32, %arg1: memref<16x256xf32, #tpu.memory_space<vmem>>, %arg2: memref<256x128xf32, #tpu.memory_space<vmem>>, %arg3: memref<1x128xf32, #tpu.memory_space<vmem>>, %arg4: memref<128x256xf32, #tpu.memory_space<vmem>>, %arg5: memref<1x256xf32, #tpu.memory_space<vmem>>, %arg6: memref<16x256xf32, #tpu.memory_space<vmem>>) attributes {dimension_semantics = [#tpu.dimension_semantics<parallel>], iteration_bounds = array<i64: 1>, scalar_prefetch = 0 : i64, scratch_operands = 0 : i64, tpu.core_type = #tpu.core_type<tc>, window_params = [{transform_indices = @transform_0, window_bounds = array<i64: 16, 256>}, {pipeline_mode = #tpu.pipeline_mode<synchronous>, transform_indices = @transform_1, window_bounds = array<i64: 256, 128>}, {pipeline_mode = #tpu.pipeline_mode<synchronous>, transform_indices = @transform_2, window_bounds = array<i64: 1, 128>}, {pipeline_mode = #tpu.pipeline_mode<synchronous>, transform_indices = @transform_3, window_bounds = array<i64: 128, 256>}, {pipeline_mode = #tpu.pipeline_mode<synchronous>, transform_indices = @transform_4, window_bounds = array<i64: 1, 256>}, {transform_indices = @transform_5, window_bounds = array<i64: 16, 256>}]} {
    %c0 = arith.constant 0 : index
    %c0_0 = arith.constant 0 : index
    %0 = vector.load %arg1[%c0, %c0_0] : memref<16x256xf32, #tpu.memory_space<vmem>>, vector<16x256xf32>
    %c0_1 = arith.constant 0 : index
    %c0_2 = arith.constant 0 : index
    %1 = vector.load %arg2[%c0_1, %c0_2] : memref<256x128xf32, #tpu.memory_space<vmem>>, vector<256x128xf32>
    %cst = arith.constant dense<0.000000e+00> : vector<16x128xf32>
    %2 = tpu.matmul %0, %1, %cst {dimension_numbers = #tpu.dot_dimension_numbers<[1], [0], [0], [1], [0, 0, 1, 1], [], []>} : vector<16x256xf32>, vector<256x128xf32>, vector<16x128xf32> -> vector<16x128xf32>
    %c0_3 = arith.constant 0 : index
    %c0_4 = arith.constant 0 : index
    %3 = vector.load %arg3[%c0_3, %c0_4] : memref<1x128xf32, #tpu.memory_space<vmem>>, vector<1x128xf32>
    %4 = vector.broadcast %3 : vector<1x128xf32> to vector<16x128xf32>
    %5 = arith.addf %2, %4 : vector<16x128xf32>
    %6 = arith.negf %5 : vector<16x128xf32>
    %7 = math.exp %6 : vector<16x128xf32>
    %cst_5 = arith.constant 1.000000e+00 : f32
    %8 = vector.broadcast %cst_5 : f32 to vector<16x128xf32>
    %9 = arith.addf %8, %7 : vector<16x128xf32>
    %10 = arith.divf %8, %9 : vector<16x128xf32>
    %c0_6 = arith.constant 0 : index
    %c0_7 = arith.constant 0 : index
    %11 = vector.load %arg4[%c0_6, %c0_7] : memref<128x256xf32, #tpu.memory_space<vmem>>, vector<128x256xf32>
    %cst_8 = arith.constant dense<0.000000e+00> : vector<16x256xf32>
    %12 = tpu.matmul %10, %11, %cst_8 {dimension_numbers = #tpu.dot_dimension_numbers<[1], [0], [0], [1], [0, 0, 1, 1], [], []>} : vector<16x128xf32>, vector<128x256xf32>, vector<16x256xf32> -> vector<16x256xf32>
    %c0_9 = arith.constant 0 : index
    %c0_10 = arith.constant 0 : index
    %13 = vector.load %arg5[%c0_9, %c0_10] : memref<1x256xf32, #tpu.memory_space<vmem>>, vector<1x256xf32>
    %14 = vector.broadcast %13 : vector<1x256xf32> to vector<16x256xf32>
    %15 = arith.addf %12, %14 : vector<16x256xf32>
    %16 = arith.negf %15 : vector<16x256xf32>
    %17 = math.exp %16 : vector<16x256xf32>
    %cst_11 = arith.constant 1.000000e+00 : f32
    %18 = vector.broadcast %cst_11 : f32 to vector<16x256xf32>
    %19 = arith.addf %18, %17 : vector<16x256xf32>
    %20 = arith.divf %18, %19 : vector<16x256xf32>
    %c0_12 = arith.constant 0 : index
    %c0_13 = arith.constant 0 : index
    %21 = vector.load %arg6[%c0_12, %c0_13] : memref<16x256xf32, #tpu.memory_space<vmem>>, vector<16x256xf32>
    tpu.vector_store %arg6[%c0_12, %c0_13], %20 {strides = array<i32>} : memref<16x256xf32, #tpu.memory_space<vmem>>, vector<16x256xf32>,
    return
  }
  func.func @transform_0(%arg0: i32) -> (i32, i32) {
    %c0_i32 = arith.constant 0 : i32
    %c0_i32_0 = arith.constant 0 : i32
    return %arg0, %c0_i32 : i32, i32
  }
  func.func @transform_1(%arg0: i32) -> (i32, i32) {
    %c0_i32 = arith.constant 0 : i32
    %c0_i32_0 = arith.constant 0 : i32
    %c0_i32_1 = arith.constant 0 : i32
    return %c0_i32, %c0_i32_0 : i32, i32
  }
  func.func @transform_2(%arg0: i32) -> (i32, i32) {
    %c0_i32 = arith.constant 0 : i32
    %c0_i32_0 = arith.constant 0 : i32
    %c0_i32_1 = arith.constant 0 : i32
    return %c0_i32, %c0_i32_0 : i32, i32
  }
  func.func @transform_3(%arg0: i32) -> (i32, i32) {
    %c0_i32 = arith.constant 0 : i32
    %c0_i32_0 = arith.constant 0 : i32
    %c0_i32_1 = arith.constant 0 : i32
    return %c0_i32, %c0_i32_0 : i32, i32
  }
  func.func @transform_4(%arg0: i32) -> (i32, i32) {
    %c0_i32 = arith.constant 0 : i32
    %c0_i32_0 = arith.constant 0 : i32
    %c0_i32_1 = arith.constant 0 : i32
    return %c0_i32, %c0_i32_0 : i32, i32
  }
  func.func @transform_5(%arg0: i32) -> (i32, i32) {
    %c0_i32 = arith.constant 0 : i32
    %c0_i32_0 = arith.constant 0 : i32
    return %arg0, %c0_i32 : i32, i32
  }
}

</mosaic_0001>

<bundles_post_ra>
// kernel: tpu_custom_call.1
= control target key start
LH: loop header
LB: loop body
LE: loop exit
PB: predicated region body
PF: predicated region fallthrough
CT: control target
= control target key end

     0   :  { %10 = vsyncpa [#allocation3], 0  ;;  %s589_s0 = inlined_call_operand.hbm [shape: f32[16,256], index: 0, kind: input, shape index: {}]   ;;  %s590_s1 = inlined_call_operand.hbm [shape: f32[256,128], index: 1, kind: input, shape index: {}]   ;;  %s591_s2 = inlined_call_operand.vmem [shape: f32[1,128], index: 2, kind: input, shape index: {}]   ;;  %s592_s3 = inlined_call_operand.hbm [shape: f32[128,256], index: 3, kind: input, shape index: {}]   ;;  %s593_s4 = inlined_call_operand.vmem [shape: f32[1,256], index: 4, kind: input, shape index: {}]   ;;  %s594_s5 = inlined_call_operand.hbm [shape: f32[16,256], index: 5, kind: output, shape index: {}]  }
   0x1   :  { %11 = vsyncpa [#allocation6], 0 }
   0x2   :  { %12 = vsyncpa [#allocation4], 0  ;;  %s523_s18 = smov [#allocation5]  }
   0x3   :  { %s30_s19 = sshll.u32 %s523_s18, 4  ;;  %s31_s19 = int_to_ptr.vmem [resolvable:$true] %s30_s19 }
   0x4   :  { %s445_s20 = scalar_lea.vmem %s31_s19, 4096  ;;  %p450_p1 = scmp.lt.s32.totalorder %s31_s19, %s31_s19 }
   0x5   :  { %p446_p0 = scmp.ne.s32.totalorder %s31_s19, %s445_s20  ;;  %p451_p2 = scmp.lt.s32.totalorder %s445_s20, %s445_s20 }
   0x7   :  { %p452_p3 = por %p451_p2, %p450_p1 }
   0x9   :  { %p453_p4 = pnand %p452_p3, %p446_p0 }
   0xb   :  { %456 = shalt.err (!%p453_p4)
}
   0xc   :  { %s524_s21 = smov 128   ;;  %s525_s22 = smov 8  }
   0xd   :  { %36 = dma.hbm_to_vmem [thread:$0]  %s590_s1, 4096, %s31_s19, [#allocation6], %s524_s21, %s524_s21, %s525_s22  }
   0xe   :  { %s526_s25 = smov [#allocation2]  }
   0xf   :  { %s18_s26 = sshll.u32 %s526_s25, 4  ;;  %s19_s26 = int_to_ptr.vmem [resolvable:$true] %s18_s26 }
  0x10   :  { %s465_s27 = scalar_lea.vmem %s19_s26, 512  ;;  %p470_p6 = scmp.lt.s32.totalorder %s19_s26, %s19_s26 }
  0x11   :  { %p466_p5 = scmp.ne.s32.totalorder %s19_s26, %s465_s27  ;;  %p471_p7 = scmp.lt.s32.totalorder %s465_s27, %s465_s27 }
  0x13   :  { %p472_p8 = por %p471_p7, %p470_p6 }
  0x15   :  { %p473_p9 = pnand %p472_p8, %p466_p5 }
  0x17   :  { %476 = shalt.err (!%p473_p9)
}
  0x18   :  { %s527_s28 = smov 256   ;;  %s528_s29 = smov 16  }
  0x19   :  { %24 = dma.hbm_to_vmem [thread:$0]  %s589_s0, 512, %s19_s26, [#allocation3], %s527_s28, %s527_s28, %s528_s29  }
  0x1a   :  { %s529_s1 = smov [#allocation7]  }
  0x1b   :  { %s44_s7 = sshll.u32 %s529_s1, 4  ;;  %s45_s7 = int_to_ptr.vmem [resolvable:$true] %s44_s7 }
  0x1c   :  { %s485_s8 = scalar_lea.vmem %s45_s7, 4096  ;;  %p490_p11 = scmp.lt.s32.totalorder %s45_s7, %s45_s7 }
  0x1d   :  { %p486_p10 = scmp.ne.s32.totalorder %s45_s7, %s485_s8  ;;  %p491_p12 = scmp.lt.s32.totalorder %s485_s8, %s485_s8 }
  0x1f   :  { %p492_p13 = por %p491_p12, %p490_p11 }
  0x21   :  { %p493_p0 = pnand %p492_p13, %p486_p10 }
  0x23   :  { %496 = shalt.err (!%p493_p0)
}
  0x24   :  { %50 = dma.hbm_to_vmem [thread:$0]  %s592_s3, 4096, %s45_s7, [#allocation6], %s527_s28, %s527_s28, %s528_s29  }
  0x25   :  { %517 = dma.done.wait [#allocation3], 512  }
  0x26   :  { %518 = vsyncadd [#allocation3], 4294966784 }
  0x27   :  { %519 = dma.done.wait [#allocation6], 8192  }
  0x28   :  { %520 = vsyncadd [#allocation6], 4294959104  ;;  %v97_v0 = vld [vmem:[#allocation5 + $0xf8] sm:$0xff]  ;;  %v96_v2 = vld [vmem:[#allocation5 + $0xf0] sm:$0xff]  ;;  %v530_v63 = vmov 0.0  }
  0x29   :  { %v81_v1 = vld [vmem:[#allocation5 + $0x78] sm:$0xff]  ;;  %366 = vmatprep.subr.mxu0 %v97_v0  ;;  %v80_v3 = vld [vmem:[#allocation5 + $0x70] sm:$0xff]  ;;  %v95_v4 = vld [vmem:[#allocation5 + $0xe8] sm:$0xff]  ;;  %300 = vmatprep.mubr.f32.mxu1 %v530_v63 }
  0x2a   :  { %367 = vmatpush3.msra.mxu0 %v81_v1  ;;  %v79_v5 = vld [vmem:[#allocation5 + $0x68] sm:$0xff]  ;;  %v94_v6 = vld [vmem:[#allocation5 + $0xe0] sm:$0xff]  ;;  %v93_v8 = vld [vmem:[#allocation5 + $0xd8] sm:$0xff] }
  0x2b   :  { %368 = vmatprep.subr.mxu0 %v96_v2  ;;  %v78_v7 = vld [vmem:[#allocation5 + $0x60] sm:$0xff]  ;;  %v77_v9 = vld [vmem:[#allocation5 + $0x58] sm:$0xff]  ;;  %v92_v10 = vld [vmem:[#allocation5 + $0xd0] sm:$0xff] }
  0x2c   :  { %369 = vmatpush3.msra.mxu0 %v80_v3  ;;  %v76_v11 = vld [vmem:[#allocation5 + $0x50] sm:$0xff]  ;;  %v91_v12 = vld [vmem:[#allocation5 + $0xc8] sm:$0xff]  ;;  %v90_v15 = vld [vmem:[#allocation5 + $0xc0] sm:$0xff] }
  0x2d   :  { %370 = vmatprep.subr.mxu0 %v95_v4  ;;  %v63_v13 = vld [vmem:[#allocation2 + $0x8] sm:$0xff]  ;;  %v74_v16 = vld [vmem:[#allocation5 + $0x40] sm:$0xff]  ;;  %v89_v17 = vld [vmem:[#allocation5 + $0xb8] sm:$0xff] }
  0x2e   :  { %371 = vmatpush3.msra.mxu0 %v79_v5  ;;  %v75_v14 = vld [vmem:[#allocation5 + $0x48] sm:$0xff]  ;;  %169 = vmatprep.mubr.f32.mxu0 %v63_v13  ;;  %v73_v18 = vld [vmem:[#allocation5 + $0x38] sm:$0xff]  ;;  %v88_v19 = vld [vmem:[#allocation5 + $0xb0] sm:$0xff] }
  0x2f   :  { %372 = vmatprep.subr.mxu0 %v94_v6  ;;  %v72_v20 = vld [vmem:[#allocation5 + $0x30] sm:$0xff]  ;;  %v87_v21 = vld [vmem:[#allocation5 + $0xa8] sm:$0xff]  ;;  %v86_v23 = vld [vmem:[#allocation5 + $0xa0] sm:$0xff] }
  0x30   :  { %373 = vmatpush3.msra.mxu0 %v78_v7  ;;  %v71_v22 = vld [vmem:[#allocation5 + $0x28] sm:$0xff]  ;;  %v70_v24 = vld [vmem:[#allocation5 + $0x20] sm:$0xff]  ;;  %v85_v25 = vld [vmem:[#allocation5 + $0x98] sm:$0xff] }
  0x31   :  { %374 = vmatprep.subr.mxu0 %v93_v8  ;;  %v69_v26 = vld [vmem:[#allocation5 + $0x18] sm:$0xff]  ;;  %v84_v27 = vld [vmem:[#allocation5 + $0x90] sm:$0xff]  ;;  %v83_v29 = vld [vmem:[#allocation5 + $0x88] sm:$0xff] }
  0x32   :  { %375 = vmatpush3.msra.mxu0 %v77_v9  ;;  %v68_v28 = vld [vmem:[#allocation5 + $0x10] sm:$0xff]  ;;  %v67_v30 = vld [vmem:[#allocation5 + $0x8] sm:$0xff]  ;;  %v82_v31 = vld [vmem:[#allocation5 + $0x80] sm:$0xff] }
  0x33   :  { %376 = vmatprep.subr.mxu0 %v92_v10  ;;  %v66_v32 = vld [vmem:[#allocation5] sm:$0xff]  ;;  %v65_v34 = vld [vmem:[#allocation2 + $0x18] sm:$0xff]  ;;  %v64_v35 = vld [vmem:[#allocation2 + $0x10] sm:$0xff] }
  0x34   :  { %377 = vmatpush3.msra.mxu0 %v76_v11  ;;  %v62_v33 = vld [vmem:[#allocation2] sm:$0xff]  ;;  %v223_v36 = vld [vmem:[#allocation7 + $0xf8] sm:$0xff]  ;;  %v222_v37 = vld [vmem:[#allocation7 + $0xf0] sm:$0xff] }
  0x35   :  { %378 = vmatprep.subr.mxu0 %v91_v12  ;;  %236 = vmatprep.subr.mxu1 %v223_v36  ;;  %v221_v38 = vld [vmem:[#allocation7 + $0xe8] sm:$0xff]  ;;  %v220_v39 = vld [vmem:[#allocation7 + $0xe0] sm:$0xff]  ;;  %v219_v40 = vld [vmem:[#allocation7 + $0xd8] sm:$0xff] }
  0x36   :  { %379 = vmatpush3.msra.mxu0 %v75_v14  ;;  %237 = vmatpush1.msra.mxu1 %v222_v37  ;;  %v218_v41 = vld [vmem:[#allocation7 + $0xd0] sm:$0xff]  ;;  %v217_v42 = vld [vmem:[#allocation7 + $0xc8] sm:$0xff]  ;;  %v216_v43 = vld [vmem:[#allocation7 + $0xc0] sm:$0xff] }
  0x37   :  { %380 = vmatprep.subr.mxu0 %v90_v15  ;;  %238 = vmatprep.subr.mxu1 %v221_v38  ;;  %v215_v44 = vld [vmem:[#allocation7 + $0xb8] sm:$0xff]  ;;  %v214_v45 = vld [vmem:[#allocation7 + $0xb0] sm:$0xff]  ;;  %v213_v46 = vld [vmem:[#allocation7 + $0xa8] sm:$0xff] }
  0x38   :  { %381 = vmatpush3.msra.mxu0 %v74_v16  ;;  %239 = vmatpush1.msra.mxu1 %v220_v39  ;;  %v212_v47 = vld [vmem:[#allocation7 + $0xa0] sm:$0xff]  ;;  %v211_v48 = vld [vmem:[#allocation7 + $0x98] sm:$0xff]  ;;  %v210_v49 = vld [vmem:[#allocation7 + $0x90] sm:$0xff] }
  0x39   :  { %382 = vmatprep.subr.mxu0 %v89_v17  ;;  %240 = vmatprep.subr.mxu1 %v219_v40  ;;  %v209_v50 = vld [vmem:[#allocation7 + $0x88] sm:$0xff]  ;;  %v208_v51 = vld [vmem:[#allocation7 + $0x80] sm:$0xff]  ;;  %v207_v52 = vld [vmem:[#allocation7 + $0x78] sm:$0xff] }
  0x3a   :  { %383 = vmatpush3.msra.mxu0 %v73_v18  ;;  %241 = vmatpush1.msra.mxu1 %v218_v41  ;;  %v206_v53 = vld [vmem:[#allocation7 + $0x70] sm:$0xff]  ;;  %v205_v54 = vld [vmem:[#allocation7 + $0x68] sm:$0xff]  ;;  %v204_v55 = vld [vmem:[#allocation7 + $0x60] sm:$0xff] }
  0x3b   :  { %384 = vmatprep.subr.mxu0 %v88_v19  ;;  %242 = vmatprep.subr.mxu1 %v217_v42  ;;  %v203_v56 = vld [vmem:[#allocation7 + $0x58] sm:$0xff]  ;;  %v202_v57 = vld [vmem:[#allocation7 + $0x50] sm:$0xff]  ;;  %v201_v58 = vld [vmem:[#allocation7 + $0x48] sm:$0xff] }
  0x3c   :  { %385 = vmatpush3.msra.mxu0 %v72_v20  ;;  %243 = vmatpush1.msra.mxu1 %v216_v43  ;;  %v200_v59 = vld [vmem:[#allocation7 + $0x40] sm:$0xff]  ;;  %v199_v60 = vld [vmem:[#allocation7 + $0x38] sm:$0xff]  ;;  %v198_v61 = vld [vmem:[#allocation7 + $0x30] sm:$0xff] }
  0x3d   :  { %386 = vmatprep.subr.mxu0 %v87_v21  ;;  %244 = vmatprep.subr.mxu1 %v215_v44  ;;  %v197_v62 = vld [vmem:[#allocation7 + $0x28] sm:$0xff]  ;;  %v196_v0 = vld [vmem:[#allocation7 + $0x20] sm:$0xff]  ;;  %v195_v1 = vld [vmem:[#allocation7 + $0x18] sm:$0xff] }
  0x3e   :  { %387 = vmatpush3.msra.mxu0 %v71_v22  ;;  %245 = vmatpush1.msra.mxu1 %v214_v45  ;;  %v194_v2 = vld [vmem:[#allocation7 + $0x10] sm:$0xff]  ;;  %v193_v3 = vld [vmem:[#allocation7 + $0x8] sm:$0xff]  ;;  %v192_v4 = vld [vmem:[#allocation7] sm:$0xff]  ;;  %v226_v22 = vlaneseq }
  0x3f   :  { %388 = vmatprep.subr.mxu0 %v86_v23  ;;  %246 = vmatprep.subr.mxu1 %v213_v46  ;;  %v359_v6 = vld [vmem:[%s591_s2] ss:$0 sm:$0xff] }
  0x40   :  { %389 = vmatpush3.msra.mxu0 %v70_v24  ;;  %247 = vmatpush1.msra.mxu1 %v212_v47  ;;  %v227_v23 = vshrl.u32 %v226_v22, 7 }
  0x41   :  { %390 = vmatprep.subr.mxu0 %v85_v25  ;;  %248 = vmatprep.subr.mxu1 %v211_v48  ;;  %v224_v25 = vld [vmem:[%s593_s4] sm:$0x3]  ;;  %s531_s4 = smov [#allocation8]  }
  0x42   :  { %391 = vmatpush3.msra.mxu0 %v69_v26  ;;  %249 = vmatpush1.msra.mxu1 %v210_v49  ;;  %v228_v24 = vsub.s32 0, %v227_v23  ;;  %v232_v26 = vsub.s32 1, %v227_v23  ;;  %s346_s12 = sshll.u32 %s531_s4, 4  ;;  %s347_s12 = int_to_ptr.vmem [resolvable:$true] %s346_s12 }
  0x43   :  { %392 = vmatprep.subr.mxu0 %v84_v27  ;;  %250 = vmatprep.subr.mxu1 %v209_v50  ;;  %s497_s13 = scalar_lea.vmem %s347_s12, 512  ;;  %p502_p2 = scmp.lt.s32.totalorder %s347_s12, %s347_s12 }
  0x44   :  { %393 = vmatpush3.msra.mxu0 %v68_v28  ;;  %251 = vmatpush1.msra.mxu1 %v208_v51  ;;  %v229_v27 = vrot.slane %v224_v25, %v228_v24  ;;  %v233_v28 = vrot.slane %v224_v25, %v232_v26  ;;  %p498_p1 = scmp.ne.s32.totalorder %s347_s12, %s497_s13  ;;  %p503_p3 = scmp.lt.s32.totalorder %s497_s13, %s497_s13 }
  0x45   :  { %394 = vmatprep.subr.mxu0 %v83_v29  ;;  %252 = vmatprep.subr.mxu1 %v207_v52 }
  0x46   :  { %395 = vmatpush3.msra.mxu0 %v67_v30  ;;  %253 = vmatpush1.msra.mxu1 %v206_v53  ;;  %p504_p4 = por %p503_p3, %p502_p2 }
  0x47   :  { %396 = vmatprep.subr.mxu0 %v82_v31  ;;  %254 = vmatprep.subr.mxu1 %v205_v54 }
  0x48   :  { %397 = vmatpush3.msra.mxu0 %v66_v32  ;;  %255 = vmatpush1.msra.mxu1 %v204_v55  ;;  %p505_p5 = pnand %p504_p4, %p498_p1 }
  0x49   :  { %170 = vmatmul.mubr.f32.vlgmr.msra.gmra.mxu0 %v62_v33  ;;  %256 = vmatprep.subr.mxu1 %v203_v56 }
  0x4a   :  { %174 = vmatprep.mubr.f32.mxu0 %v65_v34  ;;  %257 = vmatpush1.msra.mxu1 %v202_v57 }
  0x4b   :  { %258 = vmatprep.subr.mxu1 %v201_v58 }
  0x4c   :  { %259 = vmatpush1.msra.mxu1 %v200_v59 }
  0x4d   :  { %175 = vmatmul.mubr.f32.gmra.mxu0 %v64_v35  ;;  %260 = vmatprep.subr.mxu1 %v199_v60 }
  0x4e   :  { %261 = vmatpush1.msra.mxu1 %v198_v61 }
  0x4f   :  { %262 = vmatprep.subr.mxu1 %v197_v62 }
  0x50   :  { %263 = vmatpush1.msra.mxu1 %v196_v0 }
  0x51   :  { %264 = vmatprep.subr.mxu1 %v195_v1 }
  0x52   :  { %265 = vmatpush1.msra.mxu1 %v194_v2 }
  0x53   :  { %266 = vmatprep.subr.mxu1 %v193_v3 }
  0x54   :  { %267 = vmatpush1.msra.mxu1 %v192_v4 }
 0x109   :  { %v398_v5 = vpop.f32.mrf.mxu0 }
 0x10b   :  { %v399_v7 = vpop.f32.mrf.mxu0 }
 0x10c   :  { %v400_v8 = vadd.f32 %v399_v7, %v398_v5 }
 0x10d   :  { %v401_v9 = vpop.f32.mrf.mxu0 }
 0x10e   :  { %v172_v10 = vadd.f32 %v400_v8, %v359_v6 }
 0x10f   :  { %v402_v11 = vpop.f32.mrf.mxu0 }
 0x110   :  { %v360_v12 = vmul.f32 -1.442695, %v172_v10  ;;  %v403_v13 = vadd.f32 %v402_v11, %v401_v9 }
 0x112   :  { %413 = vpow2.f32 %v360_v12  ;;  %v177_v14 = vadd.f32 %v403_v13, %v359_v6 }
 0x114   :  { %v361_v15 = vmul.f32 -1.442695, %v177_v14 }
 0x116   :  { %415 = vpow2.f32 %v361_v15 }
 0x11f   :  { %v414_v16 = vpop.eup %413 }
 0x120   :  { %v186_v17 = vadd.f32 1.0, %v414_v16 }
 0x122   :  { %417 = vrcp.f32 %v186_v17 }
 0x123   :  { %v416_v18 = vpop.eup %415 }
 0x124   :  { %v187_v19 = vadd.f32 1.0, %v416_v18 }
 0x126   :  { %419 = vrcp.f32 %v187_v19 }
 0x12f   :  { %v418_v20 = vpop.eup %417 }
 0x130   :  { %301 = vmatmul.mubr.f32.vlgmr.msra.gmra.mxu1 %v418_v20 }
 0x131   :  { %306 = vmatprep.mubr.f32.mxu1 %v530_v63 }
 0x133   :  { %v420_v21 = vpop.eup %419 }
 0x134   :  { %307 = vmatmul.mubr.f32.gmra.mxu1 %v420_v21 }
 0x1f0   :  { %v302_v29 = vpop.f32.mrf.mxu1 }
 0x1f1   :  { %v303_v30 = vadd.f32 %v302_v29, %v229_v27 }
 0x1f2   :  { %v304_v31 = vpop.f32.mrf.mxu1 }
 0x1f3   :  { %v362_v32 = vmul.f32 -1.442695, %v303_v30  ;;  %v305_v33 = vadd.f32 %v304_v31, %v233_v28 }
 0x1f4   :  { %v308_v34 = vpop.f32.mrf.mxu1 }
 0x1f5   :  { %421 = vpow2.f32 %v362_v32  ;;  %v363_v35 = vmul.f32 -1.442695, %v305_v33  ;;  %v309_v36 = vadd.f32 %v308_v34, %v229_v27 }
 0x1f6   :  { %v310_v37 = vpop.f32.mrf.mxu1 }
 0x1f7   :  { %423 = vpow2.f32 %v363_v35  ;;  %v364_v38 = vmul.f32 -1.442695, %v309_v36  ;;  %v311_v39 = vadd.f32 %v310_v37, %v233_v28 }
 0x1f9   :  { %425 = vpow2.f32 %v364_v38  ;;  %v365_v40 = vmul.f32 -1.442695, %v311_v39 }
 0x1fb   :  { %427 = vpow2.f32 %v365_v40 }
 0x202   :  { %v422_v41 = vpop.eup %421 }
 0x203   :  { %v325_v42 = vadd.f32 1.0, %v422_v41 }
 0x204   :  { %v424_v43 = vpop.eup %423 }
 0x205   :  { %429 = vrcp.f32 %v325_v42  ;;  %v326_v44 = vadd.f32 1.0, %v424_v43 }
 0x206   :  { %v426_v45 = vpop.eup %425 }
 0x207   :  { %431 = vrcp.f32 %v326_v44  ;;  %v327_v46 = vadd.f32 1.0, %v426_v45 }
 0x208   :  { %v428_v47 = vpop.eup %427 }
 0x209   :  { %433 = vrcp.f32 %v327_v46  ;;  %v328_v48 = vadd.f32 1.0, %v428_v47 }
 0x20b   :  { %435 = vrcp.f32 %v328_v48 }
 0x212   :  { %v430_v49 = vpop.eup %429 }
 0x213   :  { %337 = vst [vmem:[#allocation8] sm:$0xff] %v430_v49 }
 0x214   :  { %v432_v50 = vpop.eup %431 }
 0x215   :  { %338 = vst [vmem:[#allocation8 + $0x8] sm:$0xff] %v432_v50 }
 0x216   :  { %v434_v51 = vpop.eup %433 }
 0x217   :  { %339 = vst [vmem:[#allocation8 + $0x10] sm:$0xff] %v434_v51 }
 0x218   :  { %v436_v52 = vpop.eup %435 }
 0x219   :  { %340 = vst [vmem:[#allocation8 + $0x18] sm:$0xff] %v436_v52 }
 0x21a   :  { %508 = shalt.err (!%p505_p5)
}
 0x21b   :  { %352 = dma.vmem_to_hbm [thread:$0]  %s347_s12, 512, %s594_s5, [#allocation4], %s527_s28, %s527_s28, %s528_s29  }
 0x21c   :  { %521 = dma.done.wait [#allocation4], 512  }
 0x21d   :  { %522 = vsyncadd [#allocation4], 4294966784 }
 0x21e   :  { %356 = vsyncpa [#allocation3], 1 }
 0x21f   :  { %357 = vsyncpa [#allocation6], 1 }
 0x220   :  { %358 = vsyncpa [#allocation4], 1 }

</bundles_post_ra>
